<compile_context>
chip_gen: v5e
topology: v5e:2x2
jax: 0.10.0
libtpu: 0.0.40
codegen_flags: <defaults>
</compile_context>

<pallas_src>
import math

import jax
import jax.numpy as jnp
from jax.experimental import pallas as pl
from jax.experimental.pallas import tpu as pltpu

LANE = 128
HID1, HID2 = 400, 300            # PyTorch module hidden sizes
HID1_PAD, HID2_PAD = 512, 384    # lane-padded hidden sizes


def _round_up(n, m):
    return ((n + m - 1) // m) * m


# --------------------------------------------------------------------------
# Kernel
# --------------------------------------------------------------------------
def ddpg_critic_kernel(x_ref, a_ref, w1_ref, b1_ref, w2_ref, b2_ref,
                       w3_ref, b3_ref, out_ref, cat_ref):
    # Layer 1: (Bt, obs_pad) @ (obs_pad, 512) on the MXU, f32 accumulate.
    h1 = jnp.dot(x_ref[...], w1_ref[...], preferred_element_type=jnp.float32)
    h1 = jnp.maximum(h1 + b1_ref[...], 0.0)            # (Bt, 512); cols 400: are 0

    # Build torch.cat([obs_features, a]) in a VMEM scratch (lane-aligned,
    # unmasked stores) so layer 2 is ONE fused K = 512 + act_pad matmul.
    cat_ref[:, :HID1_PAD] = h1.astype(cat_ref.dtype)   # cols [0, 512)
    cat_ref[:, HID1_PAD:] = a_ref[...]                 # cols [512, 512+act_pad)

    # Layer 2 (fused): (Bt, 640) @ (640, 384) on the MXU, f32 accumulate.
    h2 = jnp.dot(cat_ref[...], w2_ref[...], preferred_element_type=jnp.float32)
    h2 = jnp.maximum(h2 + b2_ref[...], 0.0)            # (Bt, 384); cols 300: are 0

    # Layer 3 (N=1): VPU multiply + cross-lane sum (XLU) instead of a 1-wide
    # MXU matmul; computed entirely in f32.
    q = jnp.sum(h2 * w3_ref[...], axis=-1, keepdims=True) + b3_ref[...]
    out_ref[...] = q                                    # (Bt, 1)


# --------------------------------------------------------------------------
# Host-side packing of the PyTorch-layout parameters into kernel layout.
# --------------------------------------------------------------------------
def _pack_params(p, obs_size, act_size, matmul_dtype):
    obs_pad = _round_up(obs_size, LANE)
    act_pad = _round_up(act_size, LANE)

    # W1: torch (400, obs) -> transposed & zero-padded (obs_pad, 512)
    w1k = jnp.zeros((obs_pad, HID1_PAD), jnp.float32)
    w1k = w1k.at[:obs_size, :HID1].set(p["w1"].T)
    b1k = jnp.zeros((1, HID1_PAD), jnp.float32).at[0, :HID1].set(p["b1"])

    # W2: torch (300, 400+act) -> fused (512 + act_pad, 384):
    #   rows [0,400)        = obs part, rows [400,512)          = 0,
    #   rows [512,512+act)  = act part, rows [512+act, 512+act_pad) = 0.
    w2t = p["w2"].T                                   # (400 + act, 300)
    w2k = jnp.zeros((HID1_PAD + act_pad, HID2_PAD), jnp.float32)
    w2k = w2k.at[:HID1, :HID2].set(w2t[:HID1])
    w2k = w2k.at[HID1_PAD:HID1_PAD + act_size, :HID2].set(w2t[HID1:])
    b2k = jnp.zeros((1, HID2_PAD), jnp.float32).at[0, :HID2].set(p["b2"])

    # W3: torch (1, 300) -> lane-dense f32 row (1, 384); bias as (1, 1).
    w3k = jnp.zeros((1, HID2_PAD), jnp.float32).at[0, :HID2].set(p["w3"][0])
    b3k = p["b3"].reshape(1, 1).astype(jnp.float32)

    return dict(
        w1=w1k.astype(matmul_dtype), b1=b1k,
        w2=w2k.astype(matmul_dtype), b2=b2k,
        w3=w3k, b3=b3k,
    )


# --------------------------------------------------------------------------
# Wrapper
# --------------------------------------------------------------------------
def ddpg_critic(x, a, params, *, block_b=512, matmul_dtype=jnp.bfloat16,
                vmem_limit_bytes=32 * 1024 * 1024):
    """Forward pass.  params are PyTorch-layout (see init_params)."""
    B, obs_size = x.shape
    act_size = a.shape[1]
    obs_pad = _round_up(obs_size, LANE)
    act_pad = _round_up(act_size, LANE)
    cat_dim = HID1_PAD + act_pad

    # Batch tile: multiple of 16 (safe for bf16 sublane packing), capped.
    bt = min(_round_up(block_b, 16), _round_up(B, 16))
    b_pad = _round_up(B, bt)
    grid = (b_pad // bt,)

    pk = _pack_params(params, obs_size, act_size, matmul_dtype)

    # Zero-pad inputs to lane-dense shapes; cast matmul operands once on host.
    x_p = jnp.zeros((b_pad, obs_pad), matmul_dtype).at[:B, :obs_size].set(
        x.astype(matmul_dtype))
    a_p = jnp.zeros((b_pad, act_pad), matmul_dtype).at[:B, :act_size].set(
        a.astype(matmul_dtype))

    batch = lambda i: (i, 0)   # block index moves with the grid
    const = lambda i: (0, 0)   # same block every step -> DMA'd once, resident

    out = pl.pallas_call(
        ddpg_critic_kernel,
        out_shape=jax.ShapeDtypeStruct((b_pad, 1), jnp.float32),
        grid_spec=pltpu.PrefetchScalarGridSpec(
            num_scalar_prefetch=0,
            grid=grid,
            in_specs=[
                pl.BlockSpec((bt, obs_pad), batch),            # x
                pl.BlockSpec((bt, act_pad), batch),            # a
                pl.BlockSpec((obs_pad, HID1_PAD), const),      # w1
                pl.BlockSpec((1, HID1_PAD), const),            # b1
                pl.BlockSpec((cat_dim, HID2_PAD), const),      # w2 (fused)
                pl.BlockSpec((1, HID2_PAD), const),            # b2
                pl.BlockSpec((1, HID2_PAD), const),            # w3 row
                pl.BlockSpec((1, 1), const),                   # b3
            ],
            out_specs=pl.BlockSpec((bt, 1), batch),
            scratch_shapes=[pltpu.VMEM((bt, cat_dim), matmul_dtype)],
        ),
        compiler_params=pltpu.CompilerParams(
            dimension_semantics=("parallel",),   # batch tiles split across TCs
            vmem_limit_bytes=vmem_limit_bytes,
        ),
    )(x_p, a_p, pk["w1"], pk["b1"], pk["w2"], pk["b2"], pk["w3"], pk["b3"])

    return out[:B]


# --------------------------------------------------------------------------
# Params / reference (PyTorch nn.Linear layout & init)
# --------------------------------------------------------------------------
def init_params(key, obs_size, act_size):
    """nn.Linear default init: U(-1/sqrt(fan_in), +1/sqrt(fan_in)); w is (out, in)."""
    def linear(key, fan_in, fan_out):
        kw, kb = jax.random.split(key)
        bound = 1.0 / math.sqrt(fan_in)
        w = jax.random.uniform(kw, (fan_out, fan_in), jnp.float32, -bound, bound)
        b = jax.random.uniform(kb, (fan_out,), jnp.float32, -bound, bound)
        return w, b

    k1, k2, k3 = jax.random.split(key, 3)
    w1, b1 = linear(k1, obs_size, HID1)
    w2, b2 = linear(k2, HID1 + act_size, HID2)
    w3, b3 = linear(k3, HID2, 1)
    return dict(w1=w1, b1=b1, w2=w2, b2=b2, w3=w3, b3=b3)


def ddpg_critic_ref(x, a, p):
    """Pure-JAX f32 reference of the PyTorch forward."""
    obs = jnp.maximum(x @ p["w1"].T + p["b1"], 0.0)
    cat = jnp.concatenate([obs, a], axis=1)
    h = jnp.maximum(cat @ p["w2"].T + p["b2"], 0.0)
    return h @ p["w3"].T + p["b3"]


# --------------------------------------------------------------------------
if __name__ == "__main__":
    # NOTE: these toy sizes are for correctness only; the tiling/bf16 wins are
    # observable at production batch sizes (B >= 256).
    B, obs_size, act_size = 8, 16, 4

    key = jax.random.PRNGKey(0)
    kx, ka, kp = jax.random.split(key, 3)
    x = jax.random.normal(kx, (B, obs_size), jnp.float32)
    a = jax.random.normal(ka, (B, act_size), jnp.float32)
    params = init_params(kp, obs_size, act_size)

    ref = ddpg_critic_ref(x, a, params)

    # Exact structural check (padding / fusion / VPU final layer) in f32.
    out_f32 = jax.block_until_ready(
        ddpg_critic(x, a, params, matmul_dtype=jnp.float32))
    assert out_f32.shape == (B, 1)
    assert jnp.allclose(out_f32, ref, atol=1e-4, rtol=1e-4), \
        "f32 kernel mismatch vs reference"

    # Default fast path: bf16 matmul inputs, f32 accumulation (looser tol).
    out_bf16 = jax.block_until_ready(
        ddpg_critic(x, a, params, matmul_dtype=jnp.bfloat16))
    assert out_bf16.shape == (B, 1)
    assert jnp.allclose(out_bf16, ref, atol=5e-2, rtol=5e-2), \
        "bf16 kernel mismatch vs reference"

    print("KERNEL_OK")
</pallas_src>

<mosaic_0001>
module attributes {stable_mosaic.version = 11 : i64} {
  func.func @ddpg_critic_kernel(%arg0: i32, %arg1: memref<16x128xf32, #tpu.memory_space<vmem>>, %arg2: memref<16x128xf32, #tpu.memory_space<vmem>>, %arg3: memref<128x512xf32, #tpu.memory_space<vmem>>, %arg4: memref<1x512xf32, #tpu.memory_space<vmem>>, %arg5: memref<640x384xf32, #tpu.memory_space<vmem>>, %arg6: memref<1x384xf32, #tpu.memory_space<vmem>>, %arg7: memref<1x384xf32, #tpu.memory_space<vmem>>, %arg8: memref<1x1xf32, #tpu.memory_space<vmem>>, %arg9: memref<16x1xf32, #tpu.memory_space<vmem>>, %arg10: memref<16x640xf32, #tpu.memory_space<vmem>>) attributes {dimension_semantics = [#tpu.dimension_semantics<parallel>], iteration_bounds = array<i64: 1>, scalar_prefetch = 0 : i64, scratch_operands = 1 : i64, tpu.core_type = #tpu.core_type<tc>, window_params = [{transform_indices = @transform_0, window_bounds = array<i64: 16, 128>}, {transform_indices = @transform_1, window_bounds = array<i64: 16, 128>}, {pipeline_mode = #tpu.pipeline_mode<synchronous>, transform_indices = @transform_2, window_bounds = array<i64: 128, 512>}, {pipeline_mode = #tpu.pipeline_mode<synchronous>, transform_indices = @transform_3, window_bounds = array<i64: 1, 512>}, {pipeline_mode = #tpu.pipeline_mode<synchronous>, transform_indices = @transform_4, window_bounds = array<i64: 640, 384>}, {pipeline_mode = #tpu.pipeline_mode<synchronous>, transform_indices = @transform_5, window_bounds = array<i64: 1, 384>}, {pipeline_mode = #tpu.pipeline_mode<synchronous>, transform_indices = @transform_6, window_bounds = array<i64: 1, 384>}, {pipeline_mode = #tpu.pipeline_mode<synchronous>, transform_indices = @transform_7, window_bounds = array<i64: 1, 1>}, {transform_indices = @transform_8, window_bounds = array<i64: 16, 1>}]} {
    %c0 = arith.constant 0 : index
    %c0_0 = arith.constant 0 : index
    %0 = vector.load %arg1[%c0, %c0_0] : memref<16x128xf32, #tpu.memory_space<vmem>>, vector<16x128xf32>
    %c0_1 = arith.constant 0 : index
    %c0_2 = arith.constant 0 : index
    %1 = vector.load %arg3[%c0_1, %c0_2] : memref<128x512xf32, #tpu.memory_space<vmem>>, vector<128x512xf32>
    %cst = arith.constant dense<0.000000e+00> : vector<16x512xf32>
    %2 = tpu.matmul %0, %1, %cst {dimension_numbers = #tpu.dot_dimension_numbers<[1], [0], [0], [1], [0, 0, 1, 1], [], []>} : vector<16x128xf32>, vector<128x512xf32>, vector<16x512xf32> -> vector<16x512xf32>
    %c0_3 = arith.constant 0 : index
    %c0_4 = arith.constant 0 : index
    %3 = vector.load %arg4[%c0_3, %c0_4] : memref<1x512xf32, #tpu.memory_space<vmem>>, vector<1x512xf32>
    %4 = vector.broadcast %3 : vector<1x512xf32> to vector<16x512xf32>
    %5 = arith.addf %2, %4 : vector<16x512xf32>
    %cst_5 = arith.constant 0.000000e+00 : f32
    %6 = vector.broadcast %cst_5 : f32 to vector<16x512xf32>
    %7 = arith.maximumf %5, %6 : vector<16x512xf32>
    %c0_6 = arith.constant 0 : index
    %c0_7 = arith.constant 0 : index
    %8 = vector.load %arg10[%c0_6, %c0_7] : memref<16x640xf32, #tpu.memory_space<vmem>>, vector<16x512xf32>
    tpu.vector_store %arg10[%c0_6, %c0_7], %7 {strides = array<i32>} : memref<16x640xf32, #tpu.memory_space<vmem>>, vector<16x512xf32>,
    %c0_8 = arith.constant 0 : index
    %c0_9 = arith.constant 0 : index
    %9 = vector.load %arg2[%c0_8, %c0_9] : memref<16x128xf32, #tpu.memory_space<vmem>>, vector<16x128xf32>
    %c0_10 = arith.constant 0 : index
    %c512 = arith.constant 512 : index
    %10 = vector.load %arg10[%c0_10, %c512] : memref<16x640xf32, #tpu.memory_space<vmem>>, vector<16x128xf32>
    tpu.vector_store %arg10[%c0_10, %c512], %9 {strides = array<i32>} : memref<16x640xf32, #tpu.memory_space<vmem>>, vector<16x128xf32>,
    %c0_11 = arith.constant 0 : index
    %c0_12 = arith.constant 0 : index
    %11 = vector.load %arg10[%c0_11, %c0_12] : memref<16x640xf32, #tpu.memory_space<vmem>>, vector<16x640xf32>
    %c0_13 = arith.constant 0 : index
    %c0_14 = arith.constant 0 : index
    %12 = vector.load %arg5[%c0_13, %c0_14] : memref<640x384xf32, #tpu.memory_space<vmem>>, vector<640x384xf32>
    %cst_15 = arith.constant dense<0.000000e+00> : vector<16x384xf32>
    %13 = tpu.matmul %11, %12, %cst_15 {dimension_numbers = #tpu.dot_dimension_numbers<[1], [0], [0], [1], [0, 0, 1, 1], [], []>} : vector<16x640xf32>, vector<640x384xf32>, vector<16x384xf32> -> vector<16x384xf32>
    %c0_16 = arith.constant 0 : index
    %c0_17 = arith.constant 0 : index
    %14 = vector.load %arg6[%c0_16, %c0_17] : memref<1x384xf32, #tpu.memory_space<vmem>>, vector<1x384xf32>
    %15 = vector.broadcast %14 : vector<1x384xf32> to vector<16x384xf32>
    %16 = arith.addf %13, %15 : vector<16x384xf32>
    %cst_18 = arith.constant 0.000000e+00 : f32
    %17 = vector.broadcast %cst_18 : f32 to vector<16x384xf32>
    %18 = arith.maximumf %16, %17 : vector<16x384xf32>
    %c0_19 = arith.constant 0 : index
    %c0_20 = arith.constant 0 : index
    %19 = vector.load %arg7[%c0_19, %c0_20] : memref<1x384xf32, #tpu.memory_space<vmem>>, vector<1x384xf32>
    %20 = vector.broadcast %19 : vector<1x384xf32> to vector<16x384xf32>
    %21 = arith.mulf %18, %20 : vector<16x384xf32>
    %cst_21 = arith.constant dense<0.000000e+00> : vector<16xf32>
    %22 = vector.multi_reduction <add>, %21, %cst_21 [1] : vector<16x384xf32> to vector<16xf32>
    %23 = vector.shape_cast %22 : vector<16xf32> to vector<16x1xf32>
    %c0_22 = arith.constant 0 : index
    %c0_23 = arith.constant 0 : index
    %24 = vector.load %arg8[%c0_22, %c0_23] : memref<1x1xf32, #tpu.memory_space<vmem>>, vector<1x1xf32>
    %25 = vector.broadcast %24 : vector<1x1xf32> to vector<16x1xf32>
    %26 = arith.addf %23, %25 : vector<16x1xf32>
    %c0_24 = arith.constant 0 : index
    %c0_25 = arith.constant 0 : index
    %27 = vector.load %arg9[%c0_24, %c0_25] : memref<16x1xf32, #tpu.memory_space<vmem>>, vector<16x1xf32>
    tpu.vector_store %arg9[%c0_24, %c0_25], %26 {strides = array<i32>} : memref<16x1xf32, #tpu.memory_space<vmem>>, vector<16x1xf32>,
    return
  }
  func.func @transform_0(%arg0: i32) -> (i32, i32) {
    %c0_i32 = arith.constant 0 : i32
    %c0_i32_0 = arith.constant 0 : i32
    return %arg0, %c0_i32 : i32, i32
  }
  func.func @transform_1(%arg0: i32) -> (i32, i32) {
    %c0_i32 = arith.constant 0 : i32
    %c0_i32_0 = arith.constant 0 : i32
    return %arg0, %c0_i32 : i32, i32
  }
  func.func @transform_2(%arg0: i32) -> (i32, i32) {
    %c0_i32 = arith.constant 0 : i32
    %c0_i32_0 = arith.constant 0 : i32
    %c0_i32_1 = arith.constant 0 : i32
    return %c0_i32, %c0_i32_0 : i32, i32
  }
  func.func @transform_3(%arg0: i32) -> (i32, i32) {
    %c0_i32 = arith.constant 0 : i32
    %c0_i32_0 = arith.constant 0 : i32
    %c0_i32_1 = arith.constant 0 : i32
    return %c0_i32, %c0_i32_0 : i32, i32
  }
  func.func @transform_4(%arg0: i32) -> (i32, i32) {
    %c0_i32 = arith.constant 0 : i32
    %c0_i32_0 = arith.constant 0 : i32
    %c0_i32_1 = arith.constant 0 : i32
    return %c0_i32, %c0_i32_0 : i32, i32
  }
  func.func @transform_5(%arg0: i32) -> (i32, i32) {
    %c0_i32 = arith.constant 0 : i32
    %c0_i32_0 = arith.constant 0 : i32
    %c0_i32_1 = arith.constant 0 : i32
    return %c0_i32, %c0_i32_0 : i32, i32
  }
  func.func @transform_6(%arg0: i32) -> (i32, i32) {
    %c0_i32 = arith.constant 0 : i32
    %c0_i32_0 = arith.constant 0 : i32
    %c0_i32_1 = arith.constant 0 : i32
    return %c0_i32, %c0_i32_0 : i32, i32
  }
  func.func @transform_7(%arg0: i32) -> (i32, i32) {
    %c0_i32 = arith.constant 0 : i32
    %c0_i32_0 = arith.constant 0 : i32
    %c0_i32_1 = arith.constant 0 : i32
    return %c0_i32, %c0_i32_0 : i32, i32
  }
  func.func @transform_8(%arg0: i32) -> (i32, i32) {
    %c0_i32 = arith.constant 0 : i32
    %c0_i32_0 = arith.constant 0 : i32
    return %arg0, %c0_i32 : i32, i32
  }
}

</mosaic_0001>

<bundles_post_ra>
// kernel: tpu_custom_call.1
= control target key start
LH: loop header
LB: loop body
LE: loop exit
PB: predicated region body
PF: predicated region fallthrough
CT: control target
= control target key end

     0   :  { %s1232_s0 = inlined_call_operand.hbm [shape: f32[16,128], index: 0, kind: input, shape index: {}]   ;;  %s1233_s1 = inlined_call_operand.hbm [shape: f32[16,128], index: 1, kind: input, shape index: {}]   ;;  %s1234_s2 = inlined_call_operand.hbm [shape: f32[128,512], index: 2, kind: input, shape index: {}]   ;;  %s1235_s3 = inlined_call_operand.vmem [shape: f32[1,512], index: 3, kind: input, shape index: {}]   ;;  %s1236_s4 = inlined_call_operand.hbm [shape: f32[640,384], index: 4, kind: input, shape index: {}]   ;;  %s1237_s5 = inlined_call_operand.hbm [shape: f32[1,384], index: 5, kind: input, shape index: {}]   ;;  %s1238_s6 = inlined_call_operand.vmem [shape: f32[1,384], index: 6, kind: input, shape index: {}]   ;;  %s1239_s7 = inlined_call_operand.<no memory space> [shape: f32[1,1], index: 7, kind: input, shape index: {}]   ;;  %s1240_s8 = inlined_call_operand.vmem [shape: f32[16,1], index: 8, kind: output, shape index: {}]  }
   0x1   :  { %v13_v0 = vstv %s1239_s7 }
   0x2   :  { %14 = vst [vmem:[#allocation3] sm:$0x1] %v13_v0 }
   0x3   :  { %15 = vsyncpa [#allocation5], 0 }
   0x4   :  { %16 = vsyncpa [#allocation7], 0 }
   0x5   :  { %17 = vsyncpa [#allocation10], 0  ;;  %s35_s9 = sshll.u32 %s1233_s1, 4  ;;  %s1096_s10 = smov [#allocation6]   ;;  %s36_s9 = int_to_ptr.hbm [resolvable:$true] %s35_s9 }
   0x6   :  { %s37_s11 = sshll.u32 %s1096_s10, 4  ;;  %s63_s14 = sshll.u32 %s1236_s4, 4  ;;  %s38_s11 = int_to_ptr.vmem [resolvable:$true] %s37_s11  ;;  %s64_s14 = int_to_ptr.hbm [resolvable:$true] %s63_s14 }
   0x7   :  { %s1097_s15 = smov 128   ;;  %s1098_s16 = smov 8  }
   0x8   :  { %43 = dma.hbm_to_vmem [thread:$0]  %s36_s9, 256, %s38_s11, [#allocation7], %s1097_s15, %s1097_s15, %s1098_s16  }
   0x9   :  { %s1099_s7 = smov [#allocation9]   ;;  %s1100_s18 = smov 384  }
   0xa   :  { %s65_s17 = sshll.u32 %s1099_s7, 4  ;;  %s1101_s19 = smov 24   ;;  %s66_s17 = int_to_ptr.vmem [resolvable:$true] %s65_s17 }
   0xb   :  { %71 = dma.hbm_to_vmem [thread:$0]  %s64_s14, 30720, %s66_s17, [#allocation10], %s1100_s18, %s1100_s18, %s1101_s19  }
   0xc   :  { %s22_s21 = sshll.u32 %s1232_s0, 4  ;;  %s1102_s22 = smov [#allocation4]   ;;  %s23_s21 = int_to_ptr.hbm [resolvable:$true] %s22_s21 }
   0xd   :  { %s24_s23 = sshll.u32 %s1102_s22, 4  ;;  %s48_s25 = sshll.u32 %s1234_s2, 4  ;;  %s25_s23 = int_to_ptr.vmem [resolvable:$true] %s24_s23  ;;  %s49_s25 = int_to_ptr.hbm [resolvable:$true] %s48_s25 }
   0xe   :  { %30 = dma.hbm_to_vmem [thread:$0]  %s23_s21, 256, %s25_s23, [#allocation5], %s1097_s15, %s1097_s15, %s1098_s16  }
   0xf   :  { %s1103_s26 = smov [#allocation8]   ;;  %s1104_s28 = smov 512  }
  0x10   :  { %s50_s27 = sshll.u32 %s1103_s26, 4  ;;  %s1105_s29 = smov 32   ;;  %s51_s27 = int_to_ptr.vmem [resolvable:$true] %s50_s27 }
  0x11   :  { %56 = dma.hbm_to_vmem [thread:$0]  %s49_s25, 8192, %s51_s27, [#allocation7], %s1104_s28, %s1104_s28, %s1105_s29  }
  0x12   :  { %s77_s0 = sshll.u32 %s1237_s5, 4  ;;  %s1106_s10 = smov [#allocation11]   ;;  %s78_s0 = int_to_ptr.hbm [resolvable:$true] %s77_s0 }
  0x13   :  { %s79_s11 = sshll.u32 %s1106_s10, 4  ;;  %s80_s11 = int_to_ptr.vmem [resolvable:$true] %s79_s11 }
  0x14   :  { %82 = dma.hbm_to_vmem [thread:$0]  %s78_s0, 48, %s80_s11, [#allocation10]  }
  0x15   :  { %1090 = dma.done.wait [#allocation5], 256  }
  0x16   :  { %1091 = vsyncadd [#allocation5], 4294967040 }
  0x17   :  { %1092 = dma.done.wait [#allocation7], 8448  }
  0x18   :  { %1093 = vsyncadd [#allocation7], 4294958848 }
  0x19   :  { %1094 = dma.done.wait [#allocation10], 30768  }
  0x1a   :  { %1095 = vsyncadd [#allocation10], 4294936528  ;;  %v169_v1 = vld [vmem:[#allocation8 + $0x1e0] sm:$0xff]  ;;  %v170_v2 = vld [vmem:[#allocation8 + $0x1e8] sm:$0xff]  ;;  %vm932_vm0 = vcmask 7168  }
  0x1b   :  { %v171_v3 = vld [vmem:[#allocation8 + $0x1f0] sm:$0xff]  ;;  %183 = vmatpush.msra.mxu0 %v169_v1  ;;  %206 = vmatpush.msra.mxu1 %v170_v2  ;;  %v172_v4 = vld [vmem:[#allocation8 + $0x1f8] sm:$0xff]  ;;  %v165_v5 = vld [vmem:[#allocation8 + $0x1c0] sm:$0xff] }
  0x1c   :  { %v166_v6 = vld [vmem:[#allocation8 + $0x1c8] sm:$0xff]  ;;  %229 = vmatpush.msra.mxu2 %v171_v3  ;;  %252 = vmatpush.msra.mxu3 %v172_v4  ;;  %v167_v7 = vld [vmem:[#allocation8 + $0x1d0] sm:$0xff]  ;;  %v168_v8 = vld [vmem:[#allocation8 + $0x1d8] sm:$0xff] }
  0x1d   :  { %v161_v9 = vld [vmem:[#allocation8 + $0x1a0] sm:$0xff]  ;;  %184 = vmatpush.msra.mxu0 %v165_v5  ;;  %207 = vmatpush.msra.mxu1 %v166_v6  ;;  %v162_v10 = vld [vmem:[#allocation8 + $0x1a8] sm:$0xff]  ;;  %v163_v11 = vld [vmem:[#allocation8 + $0x1b0] sm:$0xff] }
  0x1e   :  { %v164_v12 = vld [vmem:[#allocation8 + $0x1b8] sm:$0xff]  ;;  %230 = vmatpush.msra.mxu2 %v167_v7  ;;  %253 = vmatpush.msra.mxu3 %v168_v8  ;;  %v157_v13 = vld [vmem:[#allocation8 + $0x180] sm:$0xff]  ;;  %v158_v14 = vld [vmem:[#allocation8 + $0x188] sm:$0xff] }
  0x1f   :  { %185 = vmatpush.msra.mxu0 %v161_v9  ;;  %208 = vmatpush.msra.mxu1 %v162_v10  ;;  %v159_v15 = vld [vmem:[#allocation8 + $0x190] sm:$0xff]  ;;  %v160_v16 = vld [vmem:[#allocation8 + $0x198] sm:$0xff]  ;;  %v153_v17 = vld [vmem:[#allocation8 + $0x160] sm:$0xff] }
  0x20   :  { %231 = vmatpush.msra.mxu2 %v163_v11  ;;  %254 = vmatpush.msra.mxu3 %v164_v12  ;;  %v154_v18 = vld [vmem:[#allocation8 + $0x168] sm:$0xff]  ;;  %v155_v19 = vld [vmem:[#allocation8 + $0x170] sm:$0xff]  ;;  %v156_v20 = vld [vmem:[#allocation8 + $0x178] sm:$0xff] }
  0x21   :  { %186 = vmatpush.msra.mxu0 %v157_v13  ;;  %209 = vmatpush.msra.mxu1 %v158_v14  ;;  %v149_v21 = vld [vmem:[#allocation8 + $0x140] sm:$0xff]  ;;  %v150_v22 = vld [vmem:[#allocation8 + $0x148] sm:$0xff]  ;;  %v151_v23 = vld [vmem:[#allocation8 + $0x150] sm:$0xff] }
  0x22   :  { %232 = vmatpush.msra.mxu2 %v159_v15  ;;  %255 = vmatpush.msra.mxu3 %v160_v16  ;;  %v152_v24 = vld [vmem:[#allocation8 + $0x158] sm:$0xff]  ;;  %v145_v25 = vld [vmem:[#allocation8 + $0x120] sm:$0xff]  ;;  %v146_v26 = vld [vmem:[#allocation8 + $0x128] sm:$0xff] }
  0x23   :  { %187 = vmatpush.msra.mxu0 %v153_v17  ;;  %210 = vmatpush.msra.mxu1 %v154_v18  ;;  %v147_v27 = vld [vmem:[#allocation8 + $0x130] sm:$0xff]  ;;  %v148_v28 = vld [vmem:[#allocation8 + $0x138] sm:$0xff]  ;;  %v141_v29 = vld [vmem:[#allocation8 + $0x100] sm:$0xff] }
  0x24   :  { %233 = vmatpush.msra.mxu2 %v155_v19  ;;  %256 = vmatpush.msra.mxu3 %v156_v20  ;;  %v142_v30 = vld [vmem:[#allocation8 + $0x108] sm:$0xff]  ;;  %v143_v31 = vld [vmem:[#allocation8 + $0x110] sm:$0xff]  ;;  %v144_v32 = vld [vmem:[#allocation8 + $0x118] sm:$0xff] }
  0x25   :  { %188 = vmatpush.msra.mxu0 %v149_v21  ;;  %211 = vmatpush.msra.mxu1 %v150_v22  ;;  %v137_v33 = vld [vmem:[#allocation8 + $0xe0] sm:$0xff]  ;;  %v138_v34 = vld [vmem:[#allocation8 + $0xe8] sm:$0xff]  ;;  %v139_v35 = vld [vmem:[#allocation8 + $0xf0] sm:$0xff] }
  0x26   :  { %234 = vmatpush.msra.mxu2 %v151_v23  ;;  %257 = vmatpush.msra.mxu3 %v152_v24  ;;  %v140_v36 = vld [vmem:[#allocation8 + $0xf8] sm:$0xff]  ;;  %v133_v37 = vld [vmem:[#allocation8 + $0xc0] sm:$0xff]  ;;  %v134_v38 = vld [vmem:[#allocation8 + $0xc8] sm:$0xff] }
  0x27   :  { %189 = vmatpush.msra.mxu0 %v145_v25  ;;  %212 = vmatpush.msra.mxu1 %v146_v26  ;;  %v135_v39 = vld [vmem:[#allocation8 + $0xd0] sm:$0xff]  ;;  %v136_v40 = vld [vmem:[#allocation8 + $0xd8] sm:$0xff]  ;;  %v129_v41 = vld [vmem:[#allocation8 + $0xa0] sm:$0xff] }
  0x28   :  { %235 = vmatpush.msra.mxu2 %v147_v27  ;;  %258 = vmatpush.msra.mxu3 %v148_v28  ;;  %v130_v42 = vld [vmem:[#allocation8 + $0xa8] sm:$0xff]  ;;  %v131_v43 = vld [vmem:[#allocation8 + $0xb0] sm:$0xff]  ;;  %v132_v44 = vld [vmem:[#allocation8 + $0xb8] sm:$0xff] }
  0x29   :  { %190 = vmatpush.msra.mxu0 %v141_v29  ;;  %213 = vmatpush.msra.mxu1 %v142_v30  ;;  %v125_v45 = vld [vmem:[#allocation8 + $0x80] sm:$0xff]  ;;  %v126_v46 = vld [vmem:[#allocation8 + $0x88] sm:$0xff]  ;;  %v127_v47 = vld [vmem:[#allocation8 + $0x90] sm:$0xff] }
  0x2a   :  { %236 = vmatpush.msra.mxu2 %v143_v31  ;;  %259 = vmatpush.msra.mxu3 %v144_v32  ;;  %v128_v48 = vld [vmem:[#allocation8 + $0x98] sm:$0xff]  ;;  %v121_v49 = vld [vmem:[#allocation8 + $0x60] sm:$0xff]  ;;  %v122_v50 = vld [vmem:[#allocation8 + $0x68] sm:$0xff] }
  0x2b   :  { %191 = vmatpush.msra.mxu0 %v137_v33  ;;  %214 = vmatpush.msra.mxu1 %v138_v34  ;;  %v123_v51 = vld [vmem:[#allocation8 + $0x70] sm:$0xff]  ;;  %v124_v52 = vld [vmem:[#allocation8 + $0x78] sm:$0xff]  ;;  %v117_v53 = vld [vmem:[#allocation8 + $0x40] sm:$0xff] }
  0x2c   :  { %237 = vmatpush.msra.mxu2 %v139_v35  ;;  %260 = vmatpush.msra.mxu3 %v140_v36  ;;  %v118_v54 = vld [vmem:[#allocation8 + $0x48] sm:$0xff]  ;;  %v119_v55 = vld [vmem:[#allocation8 + $0x50] sm:$0xff]  ;;  %v120_v56 = vld [vmem:[#allocation8 + $0x58] sm:$0xff] }
  0x2d   :  { %192 = vmatpush.msra.mxu0 %v133_v37  ;;  %215 = vmatpush.msra.mxu1 %v134_v38  ;;  %v113_v57 = vld [vmem:[#allocation8 + $0x20] sm:$0xff]  ;;  %v114_v58 = vld [vmem:[#allocation8 + $0x28] sm:$0xff]  ;;  %v115_v59 = vld [vmem:[#allocation8 + $0x30] sm:$0xff] }
  0x2e   :  { %238 = vmatpush.msra.mxu2 %v135_v39  ;;  %261 = vmatpush.msra.mxu3 %v136_v40  ;;  %v116_v60 = vld [vmem:[#allocation8 + $0x38] sm:$0xff]  ;;  %v109_v61 = vld [vmem:[#allocation8] sm:$0xff]  ;;  %v110_v62 = vld [vmem:[#allocation8 + $0x8] sm:$0xff] }
  0x2f   :  { %193 = vmatpush.msra.mxu0 %v129_v41  ;;  %216 = vmatpush.msra.mxu1 %v130_v42  ;;  %v111_v63 = vld [vmem:[#allocation8 + $0x10] sm:$0xff]  ;;  %v112_v0 = vld [vmem:[#allocation8 + $0x18] sm:$0xff]  ;;  %v107_v1 = vld [vmem:[#allocation4] sm:$0xff] }
  0x30   :  { %239 = vmatpush.msra.mxu2 %v131_v43  ;;  %262 = vmatpush.msra.mxu3 %v132_v44  ;;  %v350_v2 = vld [vmem:[#allocation9 + $0x168] sm:$0xff]  ;;  %v347_v6 = vld [vmem:[#allocation9 + $0x150] sm:$0xff]  ;;  %v344_v10 = vld [vmem:[#allocation9 + $0x138] sm:$0xff] }
  0x31   :  { %194 = vmatpush.msra.mxu0 %v125_v45  ;;  %217 = vmatpush.msra.mxu1 %v126_v46  ;;  %v398_v3 = vld [vmem:[#allocation9 + $0x2e8] sm:$0xff]  ;;  %v395_v7 = vld [vmem:[#allocation9 + $0x2d0] sm:$0xff]  ;;  %v392_v11 = vld [vmem:[#allocation9 + $0x2b8] sm:$0xff] }
  0x32   :  { %240 = vmatpush.msra.mxu2 %v127_v47  ;;  %263 = vmatpush.msra.mxu3 %v128_v48  ;;  %v446_v4 = vld [vmem:[#allocation9 + $0x468] sm:$0xff]  ;;  %v443_v8 = vld [vmem:[#allocation9 + $0x450] sm:$0xff]  ;;  %v440_v12 = vld [vmem:[#allocation9 + $0x438] sm:$0xff] }
  0x33   :  { %195 = vmatpush.msra.mxu0 %v121_v49  ;;  %218 = vmatpush.msra.mxu1 %v122_v50  ;;  %v494_v5 = vld [vmem:[#allocation9 + $0x5e8] sm:$0xff]  ;;  %v491_v9 = vld [vmem:[#allocation9 + $0x5d0] sm:$0xff]  ;;  %v488_v13 = vld [vmem:[#allocation9 + $0x5b8] sm:$0xff] }
  0x34   :  { %241 = vmatpush.msra.mxu2 %v123_v51  ;;  %264 = vmatpush.msra.mxu3 %v124_v52  ;;  %v108_v14 = vld [vmem:[#allocation4 + $0x8] sm:$0xff]  ;;  %v341_v15 = vld [vmem:[#allocation9 + $0x120] sm:$0xff]  ;;  %v335_v23 = vld [vmem:[#allocation9 + $0xf0] sm:$0xff] }
  0x35   :  { %196 = vmatpush.msra.mxu0 %v117_v53  ;;  %219 = vmatpush.msra.mxu1 %v118_v54  ;;  %v389_v16 = vld [vmem:[#allocation9 + $0x2a0] sm:$0xff]  ;;  %v338_v19 = vld [vmem:[#allocation9 + $0x108] sm:$0xff]  ;;  %v383_v24 = vld [vmem:[#allocation9 + $0x270] sm:$0xff] }
  0x36   :  { %242 = vmatpush.msra.mxu2 %v119_v55  ;;  %265 = vmatpush.msra.mxu3 %v120_v56  ;;  %v437_v17 = vld [vmem:[#allocation9 + $0x420] sm:$0xff]  ;;  %v386_v20 = vld [vmem:[#allocation9 + $0x288] sm:$0xff]  ;;  %v431_v25 = vld [vmem:[#allocation9 + $0x3f0] sm:$0xff] }
  0x37   :  { %197 = vmatpush.msra.mxu0 %v113_v57  ;;  %220 = vmatpush.msra.mxu1 %v114_v58  ;;  %v485_v18 = vld [vmem:[#allocation9 + $0x5a0] sm:$0xff]  ;;  %v434_v21 = vld [vmem:[#allocation9 + $0x408] sm:$0xff]  ;;  %v479_v26 = vld [vmem:[#allocation9 + $0x570] sm:$0xff] }
  0x38   :  { %243 = vmatpush.msra.mxu2 %v115_v59  ;;  %266 = vmatpush.msra.mxu3 %v116_v60  ;;  %v482_v22 = vld [vmem:[#allocation9 + $0x588] sm:$0xff]  ;;  %v332_v27 = vld [vmem:[#allocation9 + $0xd8] sm:$0xff]  ;;  %v329_v31 = vld [vmem:[#allocation9 + $0xc0] sm:$0xff] }
  0x39   :  { %198 = vmatpush.msra.mxu0 %v109_v61  ;;  %221 = vmatpush.msra.mxu1 %v110_v62  ;;  %v380_v28 = vld [vmem:[#allocation9 + $0x258] sm:$0xff]  ;;  %v377_v32 = vld [vmem:[#allocation9 + $0x240] sm:$0xff]  ;;  %v326_v35 = vld [vmem:[#allocation9 + $0xa8] sm:$0xff] }
  0x3a   :  { %244 = vmatpush.msra.mxu2 %v111_v63  ;;  %267 = vmatpush.msra.mxu3 %v112_v0  ;;  %v428_v29 = vld [vmem:[#allocation9 + $0x3d8] sm:$0xff]  ;;  %v425_v33 = vld [vmem:[#allocation9 + $0x3c0] sm:$0xff]  ;;  %v374_v36 = vld [vmem:[#allocation9 + $0x228] sm:$0xff] }
  0x3b   :  { %199 = vmatmul.f32.vlgmr.msra.gmra.mxu0 %v107_v1  ;;  %222 = vmatmul.f32.vlgmr.msra.gmra.mxu1 %v107_v1  ;;  %v476_v30 = vld [vmem:[#allocation9 + $0x558] sm:$0xff]  ;;  %v473_v34 = vld [vmem:[#allocation9 + $0x540] sm:$0xff]  ;;  %v422_v37 = vld [vmem:[#allocation9 + $0x3a8] sm:$0xff] }
  0x3c   :  { %245 = vmatmul.f32.vlgmr.msra.gmra.mxu2 %v107_v1  ;;  %268 = vmatmul.f32.vlgmr.msra.gmra.mxu3 %v107_v1  ;;  %v470_v38 = vld [vmem:[#allocation9 + $0x528] sm:$0xff]  ;;  %v323_v39 = vld [vmem:[#allocation9 + $0x90] sm:$0xff]  ;;  %v320_v43 = vld [vmem:[#allocation9 + $0x78] sm:$0xff] }
  0x3d   :  { %553 = vmatpush.msrb.mxu0 %v350_v2  ;;  %576 = vmatpush.msrb.mxu1 %v398_v3  ;;  %v371_v40 = vld [vmem:[#allocation9 + $0x210] sm:$0xff]  ;;  %v368_v44 = vld [vmem:[#allocation9 + $0x1f8] sm:$0xff]  ;;  %v317_v47 = vld [vmem:[#allocation9 + $0x60] sm:$0xff] }
  0x3e   :  { %599 = vmatpush.msrb.mxu2 %v446_v4  ;;  %622 = vmatpush.msrb.mxu3 %v494_v5  ;;  %v419_v41 = vld [vmem:[#allocation9 + $0x390] sm:$0xff]  ;;  %v416_v45 = vld [vmem:[#allocation9 + $0x378] sm:$0xff]  ;;  %v365_v48 = vld [vmem:[#allocation9 + $0x1e0] sm:$0xff] }
  0x3f   :  { %554 = vmatpush.msrb.mxu0 %v347_v6  ;;  %577 = vmatpush.msrb.mxu1 %v395_v7  ;;  %v467_v42 = vld [vmem:[#allocation9 + $0x510] sm:$0xff]  ;;  %v464_v46 = vld [vmem:[#allocation9 + $0x4f8] sm:$0xff]  ;;  %v413_v49 = vld [vmem:[#allocation9 + $0x360] sm:$0xff] }
  0x40   :  { %600 = vmatpush.msrb.mxu2 %v443_v8  ;;  %623 = vmatpush.msrb.mxu3 %v491_v9  ;;  %v461_v50 = vld [vmem:[#allocation9 + $0x4e0] sm:$0xff]  ;;  %v314_v51 = vld [vmem:[#allocation9 + $0x48] sm:$0xff]  ;;  %v311_v55 = vld [vmem:[#allocation9 + $0x30] sm:$0xff] }
  0x41   :  { %555 = vmatpush.msrb.mxu0 %v344_v10  ;;  %578 = vmatpush.msrb.mxu1 %v392_v11  ;;  %v362_v52 = vld [vmem:[#allocation9 + $0x1c8] sm:$0xff]  ;;  %v359_v56 = vld [vmem:[#allocation9 + $0x1b0] sm:$0xff]  ;;  %v308_v59 = vld [vmem:[#allocation9 + $0x18] sm:$0xff] }
  0x42   :  { %601 = vmatpush.msrb.mxu2 %v440_v12  ;;  %624 = vmatpush.msrb.mxu3 %v488_v13  ;;  %v410_v53 = vld [vmem:[#allocation9 + $0x348] sm:$0xff]  ;;  %v407_v57 = vld [vmem:[#allocation9 + $0x330] sm:$0xff]  ;;  %v356_v60 = vld [vmem:[#allocation9 + $0x198] sm:$0xff] }
  0x43   :  { %202 = vmatmul.f32.gmra.mxu0 %v108_v14  ;;  %225 = vmatmul.f32.gmra.mxu1 %v108_v14  ;;  %v458_v54 = vld [vmem:[#allocation9 + $0x4c8] sm:$0xff]  ;;  %v455_v58 = vld [vmem:[#allocation9 + $0x4b0] sm:$0xff]  ;;  %v404_v61 = vld [vmem:[#allocation9 + $0x318] sm:$0xff] }
  0x44   :  { %248 = vmatmul.f32.gmra.mxu2 %v108_v14  ;;  %271 = vmatmul.f32.gmra.mxu3 %v108_v14  ;;  %v452_v62 = vld [vmem:[#allocation9 + $0x498] sm:$0xff]  ;;  %v305_v63 = vld [vmem:[#allocation9] sm:$0xff]  ;;  %v542_v1 = vld [vmem:[#allocation9 + $0x768] sm:$0xff] }
  0x45   :  { %556 = vmatpush.msrb.mxu0 %v341_v15  ;;  %579 = vmatpush.msrb.mxu1 %v389_v16  ;;  %v353_v0 = vld [vmem:[#allocation9 + $0x180] sm:$0xff]  ;;  %v351_v2 = vld [vmem:[#allocation9 + $0x170] sm:$0xff]  ;;  %v348_v6 = vld [vmem:[#allocation9 + $0x158] sm:$0xff] }
  0x46   :  { %602 = vmatpush.msrb.mxu2 %v437_v17  ;;  %625 = vmatpush.msrb.mxu3 %v485_v18  ;;  %v401_v3 = vld [vmem:[#allocation9 + $0x300] sm:$0xff]  ;;  %v539_v5 = vld [vmem:[#allocation9 + $0x750] sm:$0xff]  ;;  %v536_v9 = vld [vmem:[#allocation9 + $0x738] sm:$0xff] }
  0x47   :  { %557 = vmatpush.msrb.mxu0 %v338_v19  ;;  %580 = vmatpush.msrb.mxu1 %v386_v20  ;;  %v449_v4 = vld [vmem:[#allocation9 + $0x480] sm:$0xff]  ;;  %v399_v7 = vld [vmem:[#allocation9 + $0x2f0] sm:$0xff]  ;;  %v396_v11 = vld [vmem:[#allocation9 + $0x2d8] sm:$0xff] }
  0x48   :  { %603 = vmatpush.msrb.mxu2 %v434_v21  ;;  %626 = vmatpush.msrb.mxu3 %v482_v22  ;;  %v447_v8 = vld [vmem:[#allocation9 + $0x470] sm:$0xff]  ;;  %v345_v10 = vld [vmem:[#allocation9 + $0x140] sm:$0xff]  ;;  %v444_v12 = vld [vmem:[#allocation9 + $0x458] sm:$0xff] }
  0x49   :  { %558 = vmatpush.msrb.mxu0 %v335_v23  ;;  %581 = vmatpush.msrb.mxu1 %v383_v24  ;;  %v533_v13 = vld [vmem:[#allocation9 + $0x720] sm:$0xff]  ;;  %v342_v14 = vld [vmem:[#allocation9 + $0x128] sm:$0xff]  ;;  %v339_v18 = vld [vmem:[#allocation9 + $0x110] sm:$0xff] }
  0x4a   :  { %604 = vmatpush.msrb.mxu2 %v431_v25  ;;  %627 = vmatpush.msrb.mxu3 %v479_v26  ;;  %v393_v15 = vld [vmem:[#allocation9 + $0x2c0] sm:$0xff]  ;;  %v530_v17 = vld [vmem:[#allocation9 + $0x708] sm:$0xff]  ;;  %v527_v21 = vld [vmem:[#allocation9 + $0x6f0] sm:$0xff] }
  0x4b   :  { %559 = vmatpush.msrb.mxu0 %v332_v27  ;;  %582 = vmatpush.msrb.mxu1 %v380_v28  ;;  %v441_v16 = vld [vmem:[#allocation9 + $0x440] sm:$0xff]  ;;  %v390_v19 = vld [vmem:[#allocation9 + $0x2a8] sm:$0xff]  ;;  %v336_v22 = vld [vmem:[#allocation9 + $0xf8] sm:$0xff] }
  0x4c   :  { %605 = vmatpush.msrb.mxu2 %v428_v29  ;;  %628 = vmatpush.msrb.mxu3 %v476_v30  ;;  %v438_v20 = vld [vmem:[#allocation9 + $0x428] sm:$0xff]  ;;  %v387_v23 = vld [vmem:[#allocation9 + $0x290] sm:$0xff]  ;;  %v524_v25 = vld [vmem:[#allocation9 + $0x6d8] sm:$0xff] }
  0x4d   :  { %560 = vmatpush.msrb.mxu0 %v329_v31  ;;  %583 = vmatpush.msrb.mxu1 %v377_v32  ;;  %v435_v24 = vld [vmem:[#allocation9 + $0x410] sm:$0xff]  ;;  %v333_v26 = vld [vmem:[#allocation9 + $0xe0] sm:$0xff]  ;;  %v384_v27 = vld [vmem:[#allocation9 + $0x278] sm:$0xff] }
  0x4e   :  { %606 = vmatpush.msrb.mxu2 %v425_v33  ;;  %629 = vmatpush.msrb.mxu3 %v473_v34  ;;  %v432_v28 = vld [vmem:[#allocation9 + $0x3f8] sm:$0xff]  ;;  %v521_v29 = vld [vmem:[#allocation9 + $0x6c0] sm:$0xff]  ;;  %v330_v30 = vld [vmem:[#allocation9 + $0xc8] sm:$0xff] }
  0x4f   :  { %561 = vmatpush.msrb.mxu0 %v326_v35  ;;  %584 = vmatpush.msrb.mxu1 %v374_v36  ;;  %v381_v31 = vld [vmem:[#allocation9 + $0x260] sm:$0xff]  ;;  %v518_v33 = vld [vmem:[#allocation9 + $0x6a8] sm:$0xff]  ;;  %v327_v34 = vld [vmem:[#allocation9 + $0xb0] sm:$0xff] }
  0x50   :  { %607 = vmatpush.msrb.mxu2 %v422_v37  ;;  %630 = vmatpush.msrb.mxu3 %v470_v38  ;;  %v429_v32 = vld [vmem:[#allocation9 + $0x3e0] sm:$0xff]  ;;  %v378_v35 = vld [vmem:[#allocation9 + $0x248] sm:$0xff]  ;;  %v515_v37 = vld [vmem:[#allocation9 + $0x690] sm:$0xff] }
  0x51   :  { %562 = vmatpush.msrb.mxu0 %v323_v39  ;;  %585 = vmatpush.msrb.mxu1 %v371_v40  ;;  %v426_v36 = vld [vmem:[#allocation9 + $0x3c8] sm:$0xff]  ;;  %v324_v38 = vld [vmem:[#allocation9 + $0x98] sm:$0xff]  ;;  %v375_v39 = vld [vmem:[#allocation9 + $0x230] sm:$0xff] }
  0x52   :  { %608 = vmatpush.msrb.mxu2 %v419_v41  ;;  %631 = vmatpush.msrb.mxu3 %v467_v42  ;;  %v423_v40 = vld [vmem:[#allocation9 + $0x3b0] sm:$0xff]  ;;  %v512_v41 = vld [vmem:[#allocation9 + $0x678] sm:$0xff]  ;;  %v321_v42 = vld [vmem:[#allocation9 + $0x80] sm:$0xff] }
  0x53   :  { %563 = vmatpush.msrb.mxu0 %v320_v43  ;;  %586 = vmatpush.msrb.mxu1 %v368_v44  ;;  %v372_v43 = vld [vmem:[#allocation9 + $0x218] sm:$0xff] }
  0x54   :  { %609 = vmatpush.msrb.mxu2 %v416_v45  ;;  %632 = vmatpush.msrb.mxu3 %v464_v46  ;;  %v420_v44 = vld [vmem:[#allocation9 + $0x398] sm:$0xff]  ;;  %v509_v45 = vld [vmem:[#allocation9 + $0x660] sm:$0xff]  ;;  %v318_v46 = vld [vmem:[#allocation9 + $0x68] sm:$0xff] }
  0x55   :  { %564 = vmatpush.msrb.mxu0 %v317_v47  ;;  %587 = vmatpush.msrb.mxu1 %v365_v48  ;;  %v506_v47 = vld [vmem:[#allocation9 + $0x648] sm:$0xff]  ;;  %v315_v48 = vld [vmem:[#allocation9 + $0x50] sm:$0xff] }
  0x56   :  { %610 = vmatpush.msrb.mxu2 %v413_v49  ;;  %633 = vmatpush.msrb.mxu3 %v461_v50  ;;  %v503_v49 = vld [vmem:[#allocation9 + $0x630] sm:$0xff]  ;;  %v312_v50 = vld [vmem:[#allocation9 + $0x38] sm:$0xff] }
  0x57   :  { %565 = vmatpush.msrb.mxu0 %v314_v51  ;;  %588 = vmatpush.msrb.mxu1 %v362_v52  ;;  %v369_v51 = vld [vmem:[#allocation9 + $0x200] sm:$0xff] }
  0x58   :  { %611 = vmatpush.msrb.mxu2 %v410_v53  ;;  %634 = vmatpush.msrb.mxu3 %v458_v54  ;;  %v417_v52 = vld [vmem:[#allocation9 + $0x380] sm:$0xff]  ;;  %v500_v53 = vld [vmem:[#allocation9 + $0x618] sm:$0xff] }
  0x59   :  { %566 = vmatpush.msrb.mxu0 %v311_v55  ;;  %589 = vmatpush.msrb.mxu1 %v359_v56  ;;  %v309_v54 = vld [vmem:[#allocation9 + $0x20] sm:$0xff]  ;;  %v366_v55 = vld [vmem:[#allocation9 + $0x1e8] sm:$0xff] }
  0x5a   :  { %612 = vmatpush.msrb.mxu2 %v407_v57  ;;  %635 = vmatpush.msrb.mxu3 %v455_v58  ;;  %v414_v56 = vld [vmem:[#allocation9 + $0x368] sm:$0xff]  ;;  %v497_v57 = vld [vmem:[#allocation9 + $0x600] sm:$0xff] }
  0x5b   :  { %567 = vmatpush.msrb.mxu0 %v308_v59  ;;  %590 = vmatpush.msrb.mxu1 %v356_v60  ;;  %v306_v58 = vld [vmem:[#allocation9 + $0x8] sm:$0xff]  ;;  %v363_v59 = vld [vmem:[#allocation9 + $0x1d0] sm:$0xff] }
  0x5c   :  { %613 = vmatpush.msrb.mxu2 %v404_v61  ;;  %636 = vmatpush.msrb.mxu3 %v452_v62  ;;  %v411_v60 = vld [vmem:[#allocation9 + $0x350] sm:$0xff]  ;;  %v360_v61 = vld [vmem:[#allocation9 + $0x1b8] sm:$0xff] }
  0x5d   :  { %568 = vmatpush.msrb.mxu0 %v305_v63  ;;  %591 = vmatpush.msrb.mxu1 %v353_v0  ;;  %v408_v62 = vld [vmem:[#allocation9 + $0x338] sm:$0xff]  ;;  %v357_v63 = vld [vmem:[#allocation9 + $0x1a0] sm:$0xff] }
  0x5e   :  { %614 = vmatpush.msrb.mxu2 %v401_v3  ;;  %637 = vmatpush.msrb.mxu3 %v449_v4  ;;  %v405_v0 = vld [vmem:[#allocation9 + $0x320] sm:$0xff] }
  0x5f   :  { %645 = vmatpush.msra.mxu0 %v542_v1  ;;  %668 = vmatpush.msra.mxu1 %v351_v2  ;;  %v354_v1 = vld [vmem:[#allocation9 + $0x188] sm:$0xff]  ;;  %v173_v3 = vld [vmem:[%s1235_s3] sm:$0xf] }
  0x60   :  { %691 = vmatpush.msra.mxu2 %v399_v7  ;;  %714 = vmatpush.msra.mxu3 %v447_v8  ;;  %v402_v2 = vld [vmem:[#allocation9 + $0x308] sm:$0xff]  ;;  %v175_v4 = vperm.slane %v173_v3, 0 }
  0x61   :  { %646 = vmatpush.msra.mxu0 %v539_v5  ;;  %669 = vmatpush.msra.mxu1 %v348_v6  ;;  %v176_v5 = vperm.slane %v173_v3, 1 }
  0x62   :  { %692 = vmatpush.msra.mxu2 %v396_v11  ;;  %715 = vmatpush.msra.mxu3 %v444_v12  ;;  %v495_v12 = vld [vmem:[#allocation9 + $0x5f0] sm:$0xff] }
  0x63   :  { %647 = vmatpush.msra.mxu0 %v536_v9  ;;  %670 = vmatpush.msra.mxu1 %v345_v10 }
  0x64   :  { %693 = vmatpush.msra.mxu2 %v393_v15  ;;  %716 = vmatpush.msra.mxu3 %v441_v16  ;;  %v178_v15 = vperm.slane %v173_v3, 3  ;;  %v492_v16 = vld [vmem:[#allocation9 + $0x5d8] sm:$0xff] }
  0x65   :  { %648 = vmatpush.msra.mxu0 %v533_v13  ;;  %671 = vmatpush.msra.mxu1 %v342_v14  ;;  %v543_v13 = vld [vmem:[#allocation9 + $0x770] sm:$0xff]  ;;  %v177_v14 = vperm.slane %v173_v3, 2  ;;  %v465_v3 = vld [vmem:[#allocation9 + $0x500] sm:$0xff] }
  0x66   :  { %694 = vmatpush.msra.mxu2 %v390_v19  ;;  %717 = vmatpush.msra.mxu3 %v438_v20  ;;  %v489_v20 = vld [vmem:[#allocation9 + $0x5c0] sm:$0xff] }
  0x67   :  { %649 = vmatpush.msra.mxu0 %v530_v17  ;;  %672 = vmatpush.msra.mxu1 %v339_v18  ;;  %v540_v17 = vld [vmem:[#allocation9 + $0x758] sm:$0xff] }
  0x68   :  { %695 = vmatpush.msra.mxu2 %v387_v23  ;;  %718 = vmatpush.msra.mxu3 %v435_v24 }
  0x69   :  { %650 = vmatpush.msra.mxu0 %v527_v21  ;;  %673 = vmatpush.msra.mxu1 %v336_v22  ;;  %v537_v21 = vld [vmem:[#allocation9 + $0x740] sm:$0xff] }
  0x6a   :  { %696 = vmatpush.msra.mxu2 %v384_v27  ;;  %719 = vmatpush.msra.mxu3 %v432_v28 }
  0x6b   :  { %651 = vmatpush.msra.mxu0 %v524_v25  ;;  %674 = vmatpush.msra.mxu1 %v333_v26 }
  0x6c   :  { %697 = vmatpush.msra.mxu2 %v381_v31  ;;  %720 = vmatpush.msra.mxu3 %v429_v32  ;;  %v534_v31 = vld [vmem:[#allocation9 + $0x728] sm:$0xff] }
  0x6d   :  { %652 = vmatpush.msra.mxu0 %v521_v29  ;;  %675 = vmatpush.msra.mxu1 %v330_v30  ;;  %v486_v30 = vld [vmem:[#allocation9 + $0x5a8] sm:$0xff] }
  0x6e   :  { %698 = vmatpush.msra.mxu2 %v378_v35  ;;  %721 = vmatpush.msra.mxu3 %v426_v36  ;;  %v400_v35 = vld [vmem:[#allocation9 + $0x2f8] sm:$0xff]  ;;  %v483_v36 = vld [vmem:[#allocation9 + $0x590] sm:$0xff] }
  0x6f   :  { %653 = vmatpush.msra.mxu0 %v518_v33  ;;  %676 = vmatpush.msra.mxu1 %v327_v34  ;;  %v352_v34 = vld [vmem:[#allocation9 + $0x178] sm:$0xff] }
  0x70   :  { %699 = vmatpush.msra.mxu2 %v375_v39  ;;  %722 = vmatpush.msra.mxu3 %v423_v40  ;;  %v397_v39 = vld [vmem:[#allocation9 + $0x2e0] sm:$0xff] }
  0x71   :  { %654 = vmatpush.msra.mxu0 %v515_v37  ;;  %677 = vmatpush.msra.mxu1 %v324_v38  ;;  %v531_v37 = vld [vmem:[#allocation9 + $0x710] sm:$0xff]  ;;  %v349_v38 = vld [vmem:[#allocation9 + $0x160] sm:$0xff] }
  0x72   :  { %700 = vmatpush.msra.mxu2 %v372_v43  ;;  %723 = vmatpush.msra.mxu3 %v420_v44  ;;  %v528_v43 = vld [vmem:[#allocation9 + $0x6f8] sm:$0xff] }
  0x73   :  { %655 = vmatpush.msra.mxu0 %v512_v41  ;;  %678 = vmatpush.msra.mxu1 %v321_v42  ;;  %v480_v42 = vld [vmem:[#allocation9 + $0x578] sm:$0xff] }
  0x74   :  { %701 = vmatpush.msra.mxu2 %v369_v51  ;;  %724 = vmatpush.msra.mxu3 %v417_v52  ;;  %v343_v52 = vld [vmem:[#allocation9 + $0x130] sm:$0xff] }
  0x75   :  { %656 = vmatpush.msra.mxu0 %v509_v45  ;;  %679 = vmatpush.msra.mxu1 %v318_v46  ;;  %v346_v46 = vld [vmem:[#allocation9 + $0x148] sm:$0xff] }
  0x76   :  { %702 = vmatpush.msra.mxu2 %v366_v55  ;;  %725 = vmatpush.msra.mxu3 %v414_v56  ;;  %v522_v55 = vld [vmem:[#allocation9 + $0x6c8] sm:$0xff]  ;;  %v340_v56 = vld [vmem:[#allocation9 + $0x118] sm:$0xff] }
  0x77   :  { %657 = vmatpush.msra.mxu0 %v506_v47  ;;  %680 = vmatpush.msra.mxu1 %v315_v48  ;;  %v394_v47 = vld [vmem:[#allocation9 + $0x2c8] sm:$0xff]  ;;  %v477_v48 = vld [vmem:[#allocation9 + $0x560] sm:$0xff] }
  0x78   :  { %703 = vmatpush.msra.mxu2 %v363_v59  ;;  %726 = vmatpush.msra.mxu3 %v411_v60  ;;  %v471_v59 = vld [vmem:[#allocation9 + $0x530] sm:$0xff] }
  0x79   :  { %658 = vmatpush.msra.mxu0 %v503_v49  ;;  %681 = vmatpush.msra.mxu1 %v312_v50  ;;  %v525_v49 = vld [vmem:[#allocation9 + $0x6e0] sm:$0xff]  ;;  %v519_v60 = vld [vmem:[#allocation9 + $0x6b0] sm:$0xff] }
  0x7a   :  { %704 = vmatpush.msra.mxu2 %v360_v61  ;;  %727 = vmatpush.msra.mxu3 %v408_v62  ;;  %v337_v61 = vld [vmem:[#allocation9 + $0x100] sm:$0xff] }
  0x7b   :  { %659 = vmatpush.msra.mxu0 %v500_v53  ;;  %682 = vmatpush.msra.mxu1 %v309_v54  ;;  %v391_v53 = vld [vmem:[#allocation9 + $0x2b0] sm:$0xff]  ;;  %v474_v54 = vld [vmem:[#allocation9 + $0x548] sm:$0xff]  ;;  %v385_v62 = vld [vmem:[#allocation9 + $0x280] sm:$0xff] }
  0x7c   :  { %705 = vmatpush.msra.mxu2 %v357_v63  ;;  %728 = vmatpush.msra.mxu3 %v405_v0  ;;  %v468_v63 = vld [vmem:[#allocation9 + $0x518] sm:$0xff] }
  0x7d   :  { %660 = vmatpush.msra.mxu0 %v497_v57  ;;  %683 = vmatpush.msra.mxu1 %v306_v58  ;;  %v388_v57 = vld [vmem:[#allocation9 + $0x298] sm:$0xff]  ;;  %v1197_v58 = vld [vmem:[#allocation6] sm:$0xff] }
  0x7e   :  { %706 = vmatpush.msra.mxu2 %v354_v1  ;;  %729 = vmatpush.msra.mxu3 %v402_v2  ;;  %v516_v0 = vld [vmem:[#allocation9 + $0x698] sm:$0xff]  ;;  %v334_v1 = vld [vmem:[#allocation9 + $0xe8] sm:$0xff] }
  0x7f   :  { %v382_v2 = vld [vmem:[#allocation9 + $0x268] sm:$0xff] }
  0xb8   :  { %v200_v6 = vpop.f32.mrf.mxu0  ;;  %v223_v7 = vpop.f32.mrf.mxu1 }
  0xb9   :  { %v201_v8 = vadd.f32 %v200_v6, %v175_v4  ;;  %v224_v9 = vadd.f32 %v223_v7, %v176_v5  ;;  %v379_v6 = vld [vmem:[#allocation9 + $0x250] sm:$0xff]  ;;  %v462_v7 = vld [vmem:[#allocation9 + $0x4e8] sm:$0xff] }
  0xbb   :  { %v1173_v10 = vmax.f32 %v201_v8, 0.0  ;;  %v1175_v11 = vmax.f32 %v224_v9, 0.0  ;;  %v510_v8 = vld [vmem:[#allocation9 + $0x668] sm:$0xff]  ;;  %v328_v9 = vld [vmem:[#allocation9 + $0xb8] sm:$0xff] }
  0xbd   :  { %569 = vmatmul.f32.vlgmr.msrb.gmra.mxu0 %v1173_v10  ;;  %592 = vmatmul.f32.vlgmr.msrb.gmra.mxu1 %v1175_v11 }
  0xbe   :  { %737 = vmatpush.msrb.mxu0 %v495_v12  ;;  %760 = vmatpush.msrb.mxu1 %v543_v13  ;;  %v376_v12 = vld [vmem:[#allocation9 + $0x238] sm:$0xff] }
  0xbf   :  { %v246_v18 = vpop.f32.mrf.mxu2  ;;  %v269_v19 = vpop.f32.mrf.mxu3  ;;  %v1203_v13 = vld [vmem:[#allocation6 + $0x8] sm:$0xff] }
  0xc0   :  { %v247_v22 = vadd.f32 %v246_v18, %v177_v14  ;;  %v270_v23 = vadd.f32 %v269_v19, %v178_v15  ;;  %738 = vmatpush.msrb.mxu0 %v492_v16  ;;  %761 = vmatpush.msrb.mxu1 %v540_v17  ;;  %v203_v24 = vpop.f32.mrf.mxu0  ;;  %v226_v25 = vpop.f32.mrf.mxu1  ;;  %v325_v16 = vld [vmem:[#allocation9 + $0xa0] sm:$0xff]  ;;  %v456_v18 = vld [vmem:[#allocation9 + $0x4b8] sm:$0xff] }
  0xc1   :  { %v204_v26 = vadd.f32 %v203_v24, %v175_v4  ;;  %v227_v27 = vadd.f32 %v226_v25, %v176_v5  ;;  %v513_v4 = vld [vmem:[#allocation9 + $0x680] sm:$0xff]  ;;  %v331_v5 = vld [vmem:[#allocation9 + $0xd0] sm:$0xff]  ;;  %v504_v19 = vld [vmem:[#allocation9 + $0x638] sm:$0xff] }
  0xc2   :  { %v1179_v28 = vmax.f32 %v247_v22, 0.0  ;;  %v1181_v29 = vmax.f32 %v270_v23, 0.0  ;;  %739 = vmatpush.msrb.mxu0 %v489_v20  ;;  %762 = vmatpush.msrb.mxu1 %v537_v21  ;;  %v373_v17 = vld [vmem:[#allocation9 + $0x220] sm:$0xff]  ;;  %v322_v20 = vld [vmem:[#allocation9 + $0x88] sm:$0xff]  ;;  %v319_v24 = vld [vmem:[#allocation9 + $0x70] sm:$0xff] }
  0xc3   :  { %v1183_v32 = vmax.f32 %v204_v26, 0.0  ;;  %v1185_v33 = vmax.f32 %v227_v27, 0.0  ;;  %v370_v21 = vld [vmem:[#allocation9 + $0x208] sm:$0xff]  ;;  %v453_v22 = vld [vmem:[#allocation9 + $0x4a0] sm:$0xff]  ;;  %v367_v25 = vld [vmem:[#allocation9 + $0x1f0] sm:$0xff] }
  0xc4   :  { %615 = vmatmul.f32.vlgmr.msrb.gmra.mxu2 %v1179_v28  ;;  %638 = vmatmul.f32.vlgmr.msrb.gmra.mxu3 %v1181_v29  ;;  %v501_v23 = vld [vmem:[#allocation9 + $0x620] sm:$0xff]  ;;  %v450_v26 = vld [vmem:[#allocation9 + $0x488] sm:$0xff] }
  0xc5   :  { %740 = vmatpush.msrb.mxu0 %v486_v30  ;;  %763 = vmatpush.msrb.mxu1 %v534_v31  ;;  %v498_v27 = vld [vmem:[#allocation9 + $0x608] sm:$0xff]  ;;  %v316_v30 = vld [vmem:[#allocation9 + $0x58] sm:$0xff] }
  0xc6   :  { %783 = vmatpush.msrb.mxu2 %v352_v34  ;;  %806 = vmatpush.msrb.mxu3 %v400_v35  ;;  %v364_v31 = vld [vmem:[#allocation9 + $0x1d8] sm:$0xff] }
  0xc7   :  { %572 = vmatmul.f32.gmra.mxu0 %v1183_v32  ;;  %595 = vmatmul.f32.gmra.mxu1 %v1185_v33  ;;  %v249_v40 = vpop.f32.mrf.mxu2  ;;  %v272_v41 = vpop.f32.mrf.mxu3  ;;  %v448_v34 = vld [vmem:[#allocation9 + $0x478] sm:$0xff] }
  0xc8   :  { %741 = vmatpush.msrb.mxu0 %v483_v36  ;;  %764 = vmatpush.msrb.mxu1 %v531_v37  ;;  %v250_v44 = vadd.f32 %v249_v40, %v177_v14  ;;  %v273_v45 = vadd.f32 %v272_v41, %v178_v15  ;;  %v507_v14 = vld [vmem:[#allocation9 + $0x650] sm:$0xff]  ;;  %v496_v35 = vld [vmem:[#allocation9 + $0x5f8] sm:$0xff]  ;;  %v313_v36 = vld [vmem:[#allocation9 + $0x40] sm:$0xff] }
  0xc9   :  { %784 = vmatpush.msrb.mxu2 %v349_v38  ;;  %807 = vmatpush.msrb.mxu3 %v397_v39  ;;  %v459_v15 = vld [vmem:[#allocation9 + $0x4d0] sm:$0xff]  ;;  %v361_v37 = vld [vmem:[#allocation9 + $0x1c0] sm:$0xff]  ;;  %v310_v40 = vld [vmem:[#allocation9 + $0x28] sm:$0xff] }
  0xca   :  { %v1191_v50 = vmax.f32 %v250_v44, 0.0  ;;  %v1193_v51 = vmax.f32 %v273_v45, 0.0  ;;  %742 = vmatpush.msrb.mxu0 %v480_v42  ;;  %765 = vmatpush.msrb.mxu1 %v528_v43  ;;  %v445_v38 = vld [vmem:[#allocation9 + $0x460] sm:$0xff]  ;;  %v358_v41 = vld [vmem:[#allocation9 + $0x1a8] sm:$0xff]  ;;  %v307_v44 = vld [vmem:[#allocation9 + $0x10] sm:$0xff] }
  0xcb   :  { %785 = vmatpush.msrb.mxu2 %v346_v46  ;;  %808 = vmatpush.msrb.mxu3 %v394_v47  ;;  %v493_v39 = vld [vmem:[#allocation9 + $0x5e0] sm:$0xff]  ;;  %v442_v42 = vld [vmem:[#allocation9 + $0x448] sm:$0xff]  ;;  %v355_v45 = vld [vmem:[#allocation9 + $0x190] sm:$0xff] }
  0xcc   :  { %743 = vmatpush.msrb.mxu0 %v477_v48  ;;  %766 = vmatpush.msrb.mxu1 %v525_v49  ;;  %v490_v43 = vld [vmem:[#allocation9 + $0x5c8] sm:$0xff]  ;;  %v439_v46 = vld [vmem:[#allocation9 + $0x430] sm:$0xff]  ;;  %v544_v48 = vld [vmem:[#allocation9 + $0x778] sm:$0xff] }
  0xcd   :  { %786 = vmatpush.msrb.mxu2 %v343_v52  ;;  %809 = vmatpush.msrb.mxu3 %v391_v53  ;;  %v487_v47 = vld [vmem:[#allocation9 + $0x5b0] sm:$0xff]  ;;  %v436_v49 = vld [vmem:[#allocation9 + $0x418] sm:$0xff]  ;;  %v541_v53 = vld [vmem:[#allocation9 + $0x760] sm:$0xff] }
  0xce   :  { %618 = vmatmul.f32.gmra.mxu2 %v1191_v50  ;;  %641 = vmatmul.f32.gmra.mxu3 %v1193_v51  ;;  %v484_v52 = vld [vmem:[#allocation9 + $0x598] sm:$0xff] }
  0xcf   :  { %744 = vmatpush.msrb.mxu0 %v474_v54  ;;  %767 = vmatpush.msrb.mxu1 %v522_v55  ;;  %v433_v54 = vld [vmem:[#allocation9 + $0x400] sm:$0xff] }
  0xd0   :  { %787 = vmatpush.msrb.mxu2 %v340_v56  ;;  %810 = vmatpush.msrb.mxu3 %v388_v57  ;;  %v481_v55 = vld [vmem:[#allocation9 + $0x580] sm:$0xff]  ;;  %v538_v56 = vld [vmem:[#allocation9 + $0x748] sm:$0xff] }
  0xd1   :  { %661 = vmatmul.f32.vlgmr.msra.gmra.mxu0 %v1197_v58  ;;  %684 = vmatmul.f32.vlgmr.msra.gmra.mxu1 %v1173_v10  ;;  %v430_v57 = vld [vmem:[#allocation9 + $0x3e8] sm:$0xff] }
  0xd2   :  { %745 = vmatpush.msrb.mxu0 %v471_v59  ;;  %768 = vmatpush.msrb.mxu1 %v519_v60  ;;  %v478_v59 = vld [vmem:[#allocation9 + $0x568] sm:$0xff]  ;;  %v535_v60 = vld [vmem:[#allocation9 + $0x730] sm:$0xff] }
  0xd3   :  { %788 = vmatpush.msrb.mxu2 %v337_v61  ;;  %811 = vmatpush.msrb.mxu3 %v385_v62  ;;  %v532_v61 = vld [vmem:[#allocation9 + $0x718] sm:$0xff] }
  0xd4   :  { %746 = vmatpush.msrb.mxu0 %v468_v63  ;;  %769 = vmatpush.msrb.mxu1 %v516_v0  ;;  %v424_v62 = vld [vmem:[#allocation9 + $0x3b8] sm:$0xff]  ;;  %v529_v0 = vld [vmem:[#allocation9 + $0x700] sm:$0xff] }
  0xd5   :  { %789 = vmatpush.msrb.mxu2 %v334_v1  ;;  %812 = vmatpush.msrb.mxu3 %v382_v2  ;;  %v472_v63 = vld [vmem:[#allocation9 + $0x538] sm:$0xff]  ;;  %v421_v1 = vld [vmem:[#allocation9 + $0x3a0] sm:$0xff] }
  0xd6   :  { %747 = vmatpush.msrb.mxu0 %v465_v3  ;;  %770 = vmatpush.msrb.mxu1 %v513_v4  ;;  %v469_v2 = vld [vmem:[#allocation9 + $0x520] sm:$0xff]  ;;  %v526_v3 = vld [vmem:[#allocation9 + $0x6e8] sm:$0xff] }
  0xd7   :  { %790 = vmatpush.msrb.mxu2 %v331_v5  ;;  %813 = vmatpush.msrb.mxu3 %v379_v6  ;;  %v418_v4 = vld [vmem:[#allocation9 + $0x388] sm:$0xff]  ;;  %v523_v6 = vld [vmem:[#allocation9 + $0x6d0] sm:$0xff] }
  0xd8   :  { %707 = vmatmul.f32.vlgmr.msra.gmra.mxu2 %v1175_v11  ;;  %730 = vmatmul.f32.vlgmr.msra.gmra.mxu3 %v1179_v28  ;;  %v466_v5 = vld [vmem:[#allocation9 + $0x508] sm:$0xff] }
  0xd9   :  { %748 = vmatpush.msrb.mxu0 %v462_v7  ;;  %771 = vmatpush.msrb.mxu1 %v510_v8  ;;  %v415_v7 = vld [vmem:[#allocation9 + $0x370] sm:$0xff]  ;;  %v520_v8 = vld [vmem:[#allocation9 + $0x6b8] sm:$0xff] }
  0xda   :  { %791 = vmatpush.msrb.mxu2 %v328_v9  ;;  %814 = vmatpush.msrb.mxu3 %v376_v12  ;;  %v460_v9 = vld [vmem:[#allocation9 + $0x4d8] sm:$0xff]  ;;  %v517_v12 = vld [vmem:[#allocation9 + $0x6a0] sm:$0xff] }
  0xdb   :  { %664 = vmatmul.f32.gmra.mxu0 %v1203_v13  ;;  %772 = vmatpush.msrb.mxu1 %v507_v14  ;;  %v409_v14 = vld [vmem:[#allocation9 + $0x340] sm:$0xff] }
  0xdc   :  { %749 = vmatpush.msrb.mxu0 %v459_v15  ;;  %792 = vmatpush.msrb.mxu2 %v325_v16  ;;  %v457_v15 = vld [vmem:[#allocation9 + $0x4c0] sm:$0xff]  ;;  %v514_v16 = vld [vmem:[#allocation9 + $0x688] sm:$0xff] }
  0xdd   :  { %815 = vmatpush.msrb.mxu3 %v373_v17  ;;  %687 = vmatmul.f32.gmra.mxu1 %v1183_v32  ;;  %v406_v17 = vld [vmem:[#allocation9 + $0x328] sm:$0xff] }
  0xde   :  { %750 = vmatpush.msrb.mxu0 %v456_v18  ;;  %773 = vmatpush.msrb.mxu1 %v504_v19  ;;  %v454_v18 = vld [vmem:[#allocation9 + $0x4a8] sm:$0xff]  ;;  %v511_v19 = vld [vmem:[#allocation9 + $0x670] sm:$0xff] }
  0xdf   :  { %793 = vmatpush.msrb.mxu2 %v322_v20  ;;  %816 = vmatpush.msrb.mxu3 %v370_v21  ;;  %v403_v20 = vld [vmem:[#allocation9 + $0x310] sm:$0xff] }
  0xe0   :  { %751 = vmatpush.msrb.mxu0 %v453_v22  ;;  %774 = vmatpush.msrb.mxu1 %v501_v23  ;;  %v451_v21 = vld [vmem:[#allocation9 + $0x490] sm:$0xff]  ;;  %v508_v22 = vld [vmem:[#allocation9 + $0x658] sm:$0xff]  ;;  %v505_v23 = vld [vmem:[#allocation9 + $0x640] sm:$0xff] }
  0xe1   :  { %794 = vmatpush.msrb.mxu2 %v319_v24  ;;  %817 = vmatpush.msrb.mxu3 %v367_v25  ;;  %v502_v24 = vld [vmem:[#allocation9 + $0x628] sm:$0xff]  ;;  %v499_v25 = vld [vmem:[#allocation9 + $0x610] sm:$0xff] }
  0xe2   :  { %710 = vmatmul.f32.gmra.mxu2 %v1185_v33  ;;  %733 = vmatmul.f32.gmra.mxu3 %v1191_v50 }
  0xe3   :  { %752 = vmatpush.msrb.mxu0 %v450_v26  ;;  %775 = vmatpush.msrb.mxu1 %v498_v27 }
  0xe4   :  { %795 = vmatpush.msrb.mxu2 %v316_v30  ;;  %818 = vmatpush.msrb.mxu3 %v364_v31 }
  0xe5   :  { %829 = vmatpush.msra.mxu0 %v448_v34  ;;  %852 = vmatpush.msra.mxu1 %v496_v35 }
  0xe6   :  { %753 = vmatmul.f32.vlgmr.msrb.gmra.mxu0 %v1181_v29  ;;  %796 = vmatpush.msrb.mxu2 %v313_v36 }
  0xe7   :  { %819 = vmatpush.msrb.mxu3 %v361_v37  ;;  %830 = vmatpush.msra.mxu0 %v445_v38 }
  0xe8   :  { %853 = vmatpush.msra.mxu1 %v493_v39  ;;  %797 = vmatpush.msrb.mxu2 %v310_v40 }
  0xe9   :  { %776 = vmatmul.f32.vlgmr.msrb.gmra.mxu1 %v1197_v58  ;;  %820 = vmatpush.msrb.mxu3 %v358_v41 }
  0xea   :  { %831 = vmatpush.msra.mxu0 %v442_v42  ;;  %854 = vmatpush.msra.mxu1 %v490_v43 }
  0xeb   :  { %798 = vmatpush.msrb.mxu2 %v307_v44  ;;  %821 = vmatpush.msrb.mxu3 %v355_v45 }
  0xec   :  { %832 = vmatpush.msra.mxu0 %v439_v46  ;;  %855 = vmatpush.msra.mxu1 %v487_v47 }
  0xed   :  { %942 = vmatpush.msra.mxu3 %v448_v34  ;;  %875 = vmatpush.msra.mxu2 %v544_v48 }
  0xee   :  { %799 = vmatmul.f32.vlgmr.msrb.gmra.mxu2 %v1173_v10  ;;  %822 = vmatmul.f32.vlgmr.msrb.gmra.mxu3 %v1175_v11  ;;  %v427_v10 = vld [vmem:[#allocation9 + $0x3d0] sm:$0xff] }
  0xef   :  { %943 = vmatpush.msra.mxu3 %v445_v38  ;;  %833 = vmatpush.msra.mxu0 %v436_v49  ;;  %v475_v11 = vld [vmem:[#allocation9 + $0x550] sm:$0xff] }
  0xf0   :  { %856 = vmatpush.msra.mxu1 %v484_v52  ;;  %876 = vmatpush.msra.mxu2 %v541_v53 }
  0xf1   :  { %756 = vmatmul.f32.gmra.mxu0 %v1193_v51  ;;  %944 = vmatpush.msra.mxu3 %v442_v42 }
  0xf2   :  { %834 = vmatpush.msra.mxu0 %v433_v54  ;;  %857 = vmatpush.msra.mxu1 %v481_v55 }
  0xf3   :  { %877 = vmatpush.msra.mxu2 %v538_v56  ;;  %779 = vmatmul.f32.gmra.mxu1 %v1203_v13 }
  0xf4   :  { %945 = vmatpush.msra.mxu3 %v439_v46  ;;  %835 = vmatpush.msra.mxu0 %v430_v57 }
  0xf5   :  { %858 = vmatpush.msra.mxu1 %v478_v59  ;;  %878 = vmatpush.msra.mxu2 %v535_v60 }
  0xf6   :  { %946 = vmatpush.msra.mxu3 %v436_v49  ;;  %836 = vmatpush.msra.mxu0 %v427_v10 }
  0xf7   :  { %859 = vmatpush.msra.mxu1 %v475_v11  ;;  %879 = vmatpush.msra.mxu2 %v532_v61 }
  0xf8   :  { %802 = vmatmul.f32.gmra.mxu2 %v1183_v32  ;;  %825 = vmatmul.f32.gmra.mxu3 %v1185_v33  ;;  %v463_v32 = vld [vmem:[#allocation9 + $0x4f0] sm:$0xff]  ;;  %v412_v33 = vld [vmem:[#allocation9 + $0x358] sm:$0xff] }
  0xf9   :  { %947 = vmatpush.msra.mxu3 %v433_v54  ;;  %837 = vmatpush.msra.mxu0 %v424_v62 }
  0xfa   :  { %860 = vmatpush.msra.mxu1 %v472_v63  ;;  %880 = vmatpush.msra.mxu2 %v529_v0 }
  0xfb   :  { %948 = vmatpush.msra.mxu3 %v430_v57  ;;  %838 = vmatpush.msra.mxu0 %v421_v1 }
  0xfc   :  { %861 = vmatpush.msra.mxu1 %v469_v2  ;;  %881 = vmatpush.msra.mxu2 %v526_v3 }
  0xfd   :  { %949 = vmatpush.msra.mxu3 %v427_v10  ;;  %839 = vmatpush.msra.mxu0 %v418_v4 }
  0xfe   :  { %862 = vmatpush.msra.mxu1 %v466_v5  ;;  %882 = vmatpush.msra.mxu2 %v523_v6 }
  0xff   :  { %950 = vmatpush.msra.mxu3 %v424_v62  ;;  %840 = vmatpush.msra.mxu0 %v415_v7 }
 0x100   :  { %863 = vmatpush.msra.mxu1 %v463_v32  ;;  %883 = vmatpush.msra.mxu2 %v520_v8 }
 0x101   :  { %951 = vmatpush.msra.mxu3 %v421_v1  ;;  %841 = vmatpush.msra.mxu0 %v412_v33 }
 0x102   :  { %864 = vmatpush.msra.mxu1 %v460_v9  ;;  %884 = vmatpush.msra.mxu2 %v517_v12 }
 0x103   :  { %952 = vmatpush.msra.mxu3 %v418_v4  ;;  %842 = vmatpush.msra.mxu0 %v409_v14 }
 0x104   :  { %865 = vmatpush.msra.mxu1 %v457_v15  ;;  %885 = vmatpush.msra.mxu2 %v514_v16 }
 0x105   :  { %953 = vmatpush.msra.mxu3 %v415_v7  ;;  %843 = vmatpush.msra.mxu0 %v406_v17  ;;  %v904_v7 = vld [vmem:[%s1238_s6] sm:$0x7] }
 0x106   :  { %866 = vmatpush.msra.mxu1 %v454_v18  ;;  %886 = vmatpush.msra.mxu2 %v511_v19  ;;  %v907_v9 = vperm.slane %v904_v7, 1 }
 0x107   :  { %954 = vmatpush.msra.mxu3 %v412_v33  ;;  %844 = vmatpush.msra.mxu0 %v403_v20 }
 0x108   :  { %867 = vmatpush.msra.mxu1 %v451_v21  ;;  %887 = vmatpush.msra.mxu2 %v508_v22 }
 0x109   :  { %845 = vmatmul.f32.vlgmr.msra.gmra.mxu0 %v1179_v28  ;;  %868 = vmatmul.f32.vlgmr.msra.gmra.mxu1 %v1181_v29 }
 0x10a   :  { %955 = vmatpush.msra.mxu3 %v409_v14  ;;  %888 = vmatpush.msra.mxu2 %v505_v23 }
 0x10c   :  { %956 = vmatpush.msra.mxu3 %v406_v17  ;;  %889 = vmatpush.msra.mxu2 %v502_v24  ;;  %v906_v17 = vperm.slane %v904_v7, 0 }
 0x10e   :  { %957 = vmatpush.msra.mxu3 %v403_v20  ;;  %890 = vmatpush.msra.mxu2 %v499_v25 }
 0x10f   :  { %848 = vmatmul.f32.vlgmr.msra.gmra.mxu3 %v1191_v50  ;;  %891 = vmatmul.f32.vlgmr.msra.gmra.mxu2 %v1197_v58  ;;  %v545_v58 = vld [vmem:[#allocation11] sm:$0x7] }
 0x110   :  { %v549_v55 = vperm.slane %v545_v58, 2 }
 0x111   :  { %871 = vmatmul.f32.gmra.mxu1 %v1193_v51  ;;  %v548_v51 = vperm.slane %v545_v58, 1 }
 0x117   :  { %894 = vmatmul.f32.gmra.mxu2 %v1203_v13  ;;  %v547_v13 = vperm.slane %v545_v58, 0 }
 0x13a   :  { %v570_v26 = vpop.f32.mrf.mxu0  ;;  %v593_v28 = vpop.f32.mrf.mxu1 }
 0x13b   :  { %v571_v46 = vadd.f32 %v570_v26, %v547_v13  ;;  %v908_v26 = vperm.slane %v904_v7, 2 }
 0x13d   :  { %v594_v52 = vadd.f32 %v593_v28, %v571_v46 }
 0x144   :  { %v573_v30 = vpop.f32.mrf.mxu0  ;;  %v596_v31 = vpop.f32.mrf.mxu1 }
 0x145   :  { %v574_v56 = vadd.f32 %v573_v30, %v547_v13 }
 0x147   :  { %v616_v27 = vpop.f32.mrf.mxu2  ;;  %v639_v29 = vpop.f32.mrf.mxu3  ;;  %v597_v62 = vadd.f32 %v596_v31, %v574_v56 }
 0x148   :  { %v617_v57 = vadd.f32 %v616_v27, %v594_v52 }
 0x14a   :  { %v640_v63 = vadd.f32 %v639_v29, %v617_v57 }
 0x14e   :  { %v662_v36 = vpop.f32.mrf.mxu0  ;;  %v685_v37 = vpop.f32.mrf.mxu1 }
 0x14f   :  { %v686_v44 = vadd.f32 %v685_v37, %v548_v51  ;;  %v663_v6 = vadd.f32 %v662_v36, %v640_v63 }
 0x151   :  { %v619_v34 = vpop.f32.mrf.mxu2  ;;  %v642_v35 = vpop.f32.mrf.mxu3  ;;  %v898_v16 = vmax.f32 %v663_v6, 0.0 }
 0x152   :  { %v620_v32 = vadd.f32 %v619_v34, %v597_v62 }
 0x153   :  { %v912_v28 = vmul.f32 %v906_v17, %v898_v16 }
 0x154   :  { %v643_v18 = vadd.f32 %v642_v35, %v620_v32 }
 0x158   :  { %v665_v40 = vpop.f32.mrf.mxu0 }
 0x159   :  { %v666_v27 = vadd.f32 %v665_v40, %v643_v18  ;;  %v969_v40 = vld [vmem:[#allocation3] ss:$0 sm:$0xff] }
 0x15a   :  { %v688_v50 = vpop.f32.mrf.mxu1 }
 0x15b   :  { %v708_v38 = vpop.f32.mrf.mxu2  ;;  %v731_v39 = vpop.f32.mrf.mxu3  ;;  %v689_v59 = vadd.f32 %v688_v50, %v548_v51 }
 0x15c   :  { %v709_v47 = vadd.f32 %v708_v38, %v686_v44  ;;  %v901_v38 = vmax.f32 %v666_v27, 0.0 }
 0x15e   :  { %v732_v53 = vadd.f32 %v731_v39, %v709_v47 }
 0x163   :  { %v754_v43 = vpop.f32.mrf.mxu0 }
 0x164   :  { %v755_v60 = vadd.f32 %v754_v43, %v732_v53 }
 0x165   :  { %v711_v41 = vpop.f32.mrf.mxu2  ;;  %v734_v42 = vpop.f32.mrf.mxu3 }
 0x166   :  { %v777_v45 = vpop.f32.mrf.mxu1  ;;  %v712_v11 = vadd.f32 %v711_v41, %v689_v59 }
 0x167   :  { %v778_v1 = vadd.f32 %v777_v45, %v755_v60 }
 0x168   :  { %v735_v4 = vadd.f32 %v734_v42, %v712_v11  ;;  %v915_v42 = vmul.f32 %v906_v17, %v901_v38 }
 0x169   :  { %v899_v33 = vmax.f32 %v778_v1, 0.0 }
 0x16b   :  { %v913_v20 = vmul.f32 %v907_v9, %v899_v33 }
 0x16d   :  { %v918_v36 = vadd.f32 %v913_v20, %v912_v28 }
 0x16e   :  { %v757_v54 = vpop.f32.mrf.mxu0 }
 0x16f   :  { %v758_v14 = vadd.f32 %v757_v54, %v735_v4 }
 0x170   :  { %v780_v10 = vpop.f32.mrf.mxu1 }
 0x171   :  { %v800_v48 = vpop.f32.mrf.mxu2  ;;  %v823_v49 = vpop.f32.mrf.mxu3  ;;  %v781_v23 = vadd.f32 %v780_v10, %v758_v14 }
 0x172   :  { %v801_v61 = vadd.f32 %v800_v48, %v549_v55 }
 0x173   :  { %v902_v31 = vmax.f32 %v781_v23, 0.0 }
 0x174   :  { %v824_v5 = vadd.f32 %v823_v49, %v801_v61 }
 0x175   :  { %v916_v41 = vmul.f32 %v907_v9, %v902_v31 }
 0x177   :  { %v922_v13 = vadd.f32 %v916_v41, %v915_v42 }
 0x17b   :  { %v803_v0 = vpop.f32.mrf.mxu2  ;;  %v826_v2 = vpop.f32.mrf.mxu3 }
 0x17c   :  { %v804_v15 = vadd.f32 %v803_v0, %v549_v55 }
 0x17e   :  { %v827_v24 = vadd.f32 %v826_v2, %v804_v15 }
 0x186   :  { %v846_v3 = vpop.f32.mrf.mxu0  ;;  %v869_v12 = vpop.f32.mrf.mxu1 }
 0x187   :  { %v847_v8 = vadd.f32 %v846_v3, %v824_v5 }
 0x189   :  { %v870_v19 = vadd.f32 %v869_v12, %v847_v8 }
 0x18e   :  { %v872_v37 = vpop.f32.mrf.mxu1 }
 0x192   :  { %v849_v21 = vpop.f32.mrf.mxu3  ;;  %v892_v22 = vpop.f32.mrf.mxu2 }
 0x193   :  { %v893_v25 = vadd.f32 %v892_v22, %v870_v19  ;;  %v850_v29 = vadd.f32 %v849_v21, %v827_v24 }
 0x195   :  { %v900_v30 = vmax.f32 %v893_v25, 0.0  ;;  %v873_v39 = vadd.f32 %v872_v37, %v850_v29 }
 0x197   :  { %v914_v34 = vmul.f32 %v908_v26, %v900_v30 }
 0x199   :  { %v919_v50 = vadd.f32 %v918_v36, %v914_v34 }
 0x19a   :  { %v895_v35 = vpop.f32.mrf.mxu2 }
 0x19b   :  { %v896_v58 = vadd.f32 %v895_v35, %v873_v39  ;;  %920 = vadd.xlane.f32.xlu0 %v919_v50 }
 0x19d   :  { %v903_v51 = vmax.f32 %v896_v58, 0.0 }
 0x19f   :  { %v917_v43 = vmul.f32 %v908_v26, %v903_v51 }
 0x1a1   :  { %v923_v44 = vadd.f32 %v922_v13, %v917_v43 }
 0x1a3   :  { %924 = vadd.xlane.f32.xlu0 %v923_v44 }
 0x20e   :  { %v921_v45 = vpop.xlane.xlu0 %920 }
 0x20f   :  { %v930_v46 = vadd.f32 %v969_v40, %v921_v45 }
 0x211   :  { %933 = vst.msk [vmem:[%s1240_s8] sm:$0xff] %vm932_vm0, %v930_v46 }
 0x216   :  { %v925_v47 = vpop.xlane.xlu0 %924 }
 0x217   :  { %v931_v48 = vadd.f32 %v969_v40, %v925_v47 }
 0x219   :  { %934 = vst.msk [vmem:[%s1240_s8 + $0x8] sm:$0xff] %vm932_vm0, %v931_v48 }
 0x21a   :  { %939 = vsyncpa [#allocation5], 1 }
 0x21b   :  { %940 = vsyncpa [#allocation7], 1 }
 0x21c   :  { %941 = vsyncpa [#allocation10], 1 }

</bundles_post_ra>
